<compile_context>
chip_gen: v6e
topology: v6e:2x2x1
jax: 0.10.0
libtpu: 0.0.40
codegen_flags: <defaults>
</compile_context>

<pallas_src>
import functools

import jax
import jax.numpy as jnp
from jax.experimental import pallas as pl
from jax.experimental.pallas import tpu as pltpu

MIN_NORM = 1e-15


def _round_up(v, m):
    return (v + m - 1) // m * m


# ----------------------------------------------------------------------------
# Pallas kernel
# ----------------------------------------------------------------------------
def _mobius_mlr_kernel(x_ref, wp_ref, wa_ref, cst_ref, o_ref, *, c, mm_dtype):
    """One (batch-tile, class-tile) block of hyperbolic MLR logits.

    x_ref   : (TB, Dp)  input points, f32
    wp_ref  : (Dp, TK)  p_k columns (pre-transposed), mm_dtype
    wa_ref  : (Dp, TK)  a_k columns (pre-transposed), mm_dtype
    cst_ref : (8,  TK)  packed per-class constants, f32
                        row 0: -<p_k, a_k>
                        row 1: beta_k        = 1 - c*||p_k||^2
                        row 2: col_scale_k   = 2*sqrt(c)/max(beta_k*||a_k||, MIN_NORM)
                        row 3: logit_scale_k = (2/sqrt(c)) * ||a_k||
    o_ref   : (TB, TK)  logits, f32
    """
    x = x_ref[...]                                          # (TB, Dp) f32
    y2 = jnp.sum(x * x, axis=-1, keepdims=True)             # (TB, 1)
    r_row = 1.0 + c * y2                                    # (TB, 1)
    # Exact per-row reciprocal (cheap: TB values, not TB*TK).
    inv_row = 1.0 / jnp.maximum(1.0 - c * y2, MIN_NORM)     # (TB, 1)

    # Two MXU matmuls on the pre-transposed slabs (f32 accumulation).
    x_mm = x.astype(mm_dtype)
    xp = jnp.dot(x_mm, wp_ref[...], preferred_element_type=jnp.float32)  # <x,p>
    xa = jnp.dot(x_mm, wa_ref[...], preferred_element_type=jnp.float32)  # <x,a>

    cst = cst_ref[...]                                      # (8, TK) f32
    neg_pa = cst[0:1, :]
    beta = cst[1:2, :]
    col_scale = cst[2:3, :]
    logit_scale = cst[3:4, :]

    # alpha = 1 + 2c*<-p,x> + c*||x||^2 ; num = <(-p)(+)x, a> * denom
    alpha = r_row - (2.0 * c) * xp
    num = alpha * neg_pa + beta * xa
    # Mobius-norm identity: denom cancels -> rank-1 scaling.
    z = (num * inv_row) * col_scale
    # geoopt arsinh: log(clamp_min(z + sqrt(1 + z^2), MIN_NORM))
    arsinh = jnp.log(jnp.maximum(z + jnp.sqrt(1.0 + z * z), MIN_NORM))
    o_ref[...] = (logit_scale * arsinh).astype(o_ref.dtype)


# ----------------------------------------------------------------------------
# Wrapper
# ----------------------------------------------------------------------------
def mobius_mlr(x, p_k, a_k, *, c=1.0, batch_tile=None, class_tile=None,
               matmul_dtype=jnp.bfloat16):
    """x: (B, D), p_k/a_k: (K, D) -> logits (B, K) f32.

    matmul_dtype: dtype of the MXU matmul operands (accumulation and the whole
    epilogue stay f32).  bf16 default (native MXU rate on v5e/v6e/v7x); use
    jnp.float32 for tighter parity with the PyTorch reference.
    """
    B, D = x.shape
    K, D_ = p_k.shape
    assert D_ == D and a_k.shape == (K, D)

    x = x.astype(jnp.float32)
    p_k = p_k.astype(jnp.float32)
    a_k = a_k.astype(jnp.float32)
    c = float(c)
    sqrt_c = c ** 0.5
    mm_dtype = jnp.dtype(matmul_dtype)
    itemsize_w = mm_dtype.itemsize

    # ---- generation-aware VMEM budgeting ------------------------------------
    try:
        vmem_cap = int(pltpu.get_tpu_info().vmem_capacity_bytes)
    except Exception:
        vmem_cap = 64 * 1024 * 1024          # conservative (v7x-sized) fallback
    budget = int(0.60 * vmem_cap)            # tile-sizing budget
    vmem_cap_limit = int(0.80 * vmem_cap)    # never request all of physical VMEM

    Dp = _round_up(D, 128)
    K128 = _round_up(K, 128)

    # TODO(synk): single-buffer the constant weight slabs via
    # pipeline_mode=pl.Buffered(1) once verified on this JAX build; until then
    # the budget conservatively counts them double-buffered.
    def w_bytes(tk):      # p & a slabs (double-buffered) + packed constants
        return itemsize_w * 2 * (2 * tk * Dp) + 4 * 2 * 8 * tk

    def row_bytes(tk):    # per batch row: x tile + out tile, double-buffered
        return 4 * 2 * Dp + 4 * 2 * tk

    # ---- class tile (K streaming only when the slab exceeds the budget) -----
    if class_tile is not None:
        tk = max(128, min(_round_up(class_tile, 128), K128))
    else:
        per_tk = itemsize_w * 4 * Dp + 64 + 128 * 8   # bytes/class with 128-row tile
        avail = budget - 128 * 8 * Dp                 # minus the 128-row x tile
        tk_fit = (avail // per_tk) // 128 * 128 if avail > 0 else 0
        tk = min(K128, max(128, tk_fit))
    Kp = _round_up(K, tk)
    nk = Kp // tk

    # ---- batch tile ----------------------------------------------------------
    if batch_tile is None:
        rem = budget - w_bytes(tk)
        bt = rem // row_bytes(tk) if rem > 0 else 8
        bt = (int(max(8, min(1024, bt))) // 8) * 8
        bt = min(bt, _round_up(B, 8))
        if B >= 16:
            # >= 2 batch grid steps so megacore / v7x's two TCs can split work.
            bt = min(bt, _round_up((B + 1) // 2, 8))
        batch_tile = max(8, bt)
    Bp = _round_up(B, batch_tile)
    nb = Bp // batch_tile

    # ---- padded / pre-transposed operands ------------------------------------
    # Zero padding is exact (contributes nothing to any inner product / norm);
    # padded logits are finite and sliced off below.
    x_p = jnp.pad(x, ((0, Bp - B), (0, Dp - D)))
    pk_p = jnp.pad(p_k, ((0, Kp - K), (0, Dp - D)))
    ak_p = jnp.pad(a_k, ((0, Kp - K), (0, Dp - D)))
    wp = pk_p.T.astype(mm_dtype)                  # (Dp, Kp), natural MXU rhs
    wa = ak_p.T.astype(mm_dtype)                  # (Dp, Kp)

    # ---- per-class constants, packed into one sublane-aligned (8, Kp) slab ---
    p2 = jnp.sum(pk_p * pk_p, axis=-1)
    pa = jnp.sum(pk_p * ak_p, axis=-1)
    a_norm = jnp.maximum(jnp.sqrt(jnp.sum(ak_p * ak_p, axis=-1)), MIN_NORM)
    beta = 1.0 - c * p2
    col_scale = (2.0 * sqrt_c) / jnp.maximum(beta * a_norm, MIN_NORM)
    logit_scale = (2.0 / sqrt_c) * a_norm
    cst = jnp.concatenate(
        [jnp.stack([-pa, beta, col_scale, logit_scale], axis=0),
         jnp.zeros((4, Kp), jnp.float32)], axis=0)                   # (8, Kp)

    kernel = functools.partial(_mobius_mlr_kernel, c=c, mm_dtype=mm_dtype)

    if nk == 1:
        # Weight slabs resident (constant block index -> fetched once).
        grid = (nb,)
        in_specs = [
            pl.BlockSpec((batch_tile, Dp), lambda i: (i, 0)),
            pl.BlockSpec((Dp, Kp), lambda i: (0, 0)),
            pl.BlockSpec((Dp, Kp), lambda i: (0, 0)),
            pl.BlockSpec((8, Kp), lambda i: (0, 0)),
        ]
        out_specs = pl.BlockSpec((batch_tile, Kp), lambda i: (i, 0))
        dim_sem = ("parallel",)
    else:
        # Stream weights per class tile; class axis outermost so each weight
        # tile is fetched exactly once while x tiles stream underneath.
        grid = (nk, nb)
        in_specs = [
            pl.BlockSpec((batch_tile, Dp), lambda k, b: (b, 0)),
            pl.BlockSpec((Dp, tk), lambda k, b: (0, k)),
            pl.BlockSpec((Dp, tk), lambda k, b: (0, k)),
            pl.BlockSpec((8, tk), lambda k, b: (0, k)),
        ]
        out_specs = pl.BlockSpec((batch_tile, tk), lambda k, b: (b, k))
        dim_sem = ("parallel", "parallel")

    vmem_est = w_bytes(tk) + batch_tile * row_bytes(tk) + (2 << 20)
    vmem_limit = int(min(vmem_cap_limit, max(32 * 1024 * 1024, 2 * vmem_est)))

    cost = pl.CostEstimate(
        flops=2 * Bp * (2 * Kp) * Dp + 15 * Bp * Kp,
        transcendentals=2 * Bp * Kp,
        bytes_accessed=4 * Bp * Dp * nk + itemsize_w * 2 * Kp * Dp
        + 4 * 8 * Kp + 4 * Bp * Kp)

    # TODO(synk): for embedding-scale D add a third ("arbitrary") D-reduction
    # grid axis with a VMEM accumulator and a pl.when-gated epilogue.
    out = pl.pallas_call(
        kernel,
        out_shape=jax.ShapeDtypeStruct((Bp, Kp), jnp.float32),
        grid_spec=pltpu.PrefetchScalarGridSpec(
            num_scalar_prefetch=0,
            grid=grid,
            in_specs=in_specs,
            out_specs=out_specs,
        ),
        compiler_params=pltpu.CompilerParams(
            dimension_semantics=dim_sem,
            vmem_limit_bytes=vmem_limit),
        cost_estimate=cost,
    )(x_p, wp, wa, cst)

    return out[:B, :K]


# ----------------------------------------------------------------------------
# Pure-JAX reference (follows the PyTorch / geoopt code path literally)
# ----------------------------------------------------------------------------
def mobius_mlr_reference(x, p_k, a_k, *, c=1.0):
    sqrt_c = c ** 0.5
    xp = x[:, None, :]                       # (B, 1, D)
    mp = -p_k[None, :, :]                    # (1, K, D)
    # mobius_add(-p, x)  with k = -c
    x2 = jnp.sum(mp * mp, axis=-1, keepdims=True)
    y2 = jnp.sum(xp * xp, axis=-1, keepdims=True)
    xy = jnp.sum(mp * xp, axis=-1, keepdims=True)
    num = (1 + 2 * c * xy + c * y2) * mp + (1 - c * x2) * xp
    den = jnp.maximum(1 + 2 * c * xy + c * c * x2 * y2, MIN_NORM)
    mpx = num / den                          # (B, K, D)

    mpx_sqnorm = jnp.maximum(jnp.sum(mpx * mpx, axis=-1), MIN_NORM)
    mpx_dot_a = jnp.sum(mpx * a_k[None, :, :], axis=-1)
    a_norm = jnp.maximum(jnp.linalg.norm(a_k, axis=-1), MIN_NORM)[None, :]
    num2 = 2 * sqrt_c * mpx_dot_a
    den2 = jnp.maximum((1 - c * mpx_sqnorm) * a_norm, MIN_NORM)
    z = num2 / den2
    arsinh = jnp.log(jnp.maximum(z + jnp.sqrt(1 + z * z), MIN_NORM))
    return 2 * a_norm * (arsinh / sqrt_c)


# ----------------------------------------------------------------------------
# Deterministic parameter init (mirrors MobiusMLR.__init__)
# ----------------------------------------------------------------------------
def init_params(key, in_features, out_features, c=1.0):
    k_p, k_a = jax.random.split(key)
    # p_k: expmap0(randn * 1e-5)
    u = jax.random.normal(k_p, (out_features, in_features), jnp.float32) * 1e-5
    sqrt_c = c ** 0.5
    u_norm = jnp.maximum(jnp.linalg.norm(u, axis=-1, keepdims=True), MIN_NORM)
    p_k = jnp.tanh(sqrt_c * u_norm) * u / (sqrt_c * u_norm)
    # a_k: uniform(-stdv, stdv)
    stdv = (6.0 / (out_features + in_features)) ** 0.5
    a_k = jax.random.uniform(k_a, (out_features, in_features), jnp.float32,
                             minval=-stdv, maxval=stdv)
    return p_k, a_k


if __name__ == "__main__":
    key = jax.random.PRNGKey(0)
    k_x1, k_p1, k_x2, k_p2, k_x3, k_p3 = jax.random.split(key, 6)

    # Case 1: standard small shapes; default bf16 MXU path + tight f32 check.
    B, D, K, c = 16, 32, 16, 1.0
    x = 0.3 * jax.random.normal(k_x1, (B, D), jnp.float32)
    x = x / (1.0 + jnp.linalg.norm(x, axis=-1, keepdims=True))   # inside ball
    p_k, a_k = init_params(k_p1, D, K, c=c)
    ref = mobius_mlr_reference(x, p_k, a_k, c=c)

    out_bf16 = jax.block_until_ready(mobius_mlr(x, p_k, a_k, c=c))
    assert out_bf16.shape == (B, K) and out_bf16.dtype == jnp.float32
    assert jnp.allclose(out_bf16, ref, rtol=5e-2, atol=2e-2), "case1 bf16 mismatch"

    out_f32 = jax.block_until_ready(
        mobius_mlr(x, p_k, a_k, c=c, matmul_dtype=jnp.float32))
    assert jnp.allclose(out_f32, ref, rtol=3e-3, atol=1e-5), "case1 f32 mismatch"

    # Case 2: ragged shapes exercising batch / class / feature padding paths.
    B2, D2, K2, c2 = 10, 20, 5, 0.5
    x2 = 0.3 * jax.random.normal(k_x2, (B2, D2), jnp.float32)
    x2 = x2 / (1.0 + jnp.linalg.norm(x2, axis=-1, keepdims=True))
    pk2, ak2 = init_params(k_p2, D2, K2, c=c2)
    out2 = jax.block_until_ready(
        mobius_mlr(x2, pk2, ak2, c=c2, matmul_dtype=jnp.float32))
    ref2 = mobius_mlr_reference(x2, pk2, ak2, c=c2)
    assert out2.shape == (B2, K2) and out2.dtype == jnp.float32
    assert jnp.allclose(out2, ref2, rtol=3e-3, atol=1e-5), "case2 mismatch"

    # Case 3: force the K-streaming (2-D grid, weight-tiled) path.
    B3, D3, K3, c3 = 24, 40, 300, 1.0
    x3 = 0.3 * jax.random.normal(k_x3, (B3, D3), jnp.float32)
    x3 = x3 / (1.0 + jnp.linalg.norm(x3, axis=-1, keepdims=True))
    pk3, ak3 = init_params(k_p3, D3, K3, c=c3)
    out3 = jax.block_until_ready(
        mobius_mlr(x3, pk3, ak3, c=c3, class_tile=128, matmul_dtype=jnp.float32))
    ref3 = mobius_mlr_reference(x3, pk3, ak3, c=c3)
    assert out3.shape == (B3, K3) and out3.dtype == jnp.float32
    assert jnp.allclose(out3, ref3, rtol=3e-3, atol=1e-5), "case3 mismatch"

    print("KERNEL_OK")
</pallas_src>

<mosaic_0001>
module attributes {stable_mosaic.version = 11 : i64} {
  func.func @_mobius_mlr_kernel(%arg0: i32, %arg1: memref<8x128xf32, #tpu.memory_space<vmem>>, %arg2: memref<128x128xbf16, #tpu.memory_space<vmem>>, %arg3: memref<128x128xbf16, #tpu.memory_space<vmem>>, %arg4: memref<8x128xf32, #tpu.memory_space<vmem>>, %arg5: memref<8x128xf32, #tpu.memory_space<vmem>>) attributes {dimension_semantics = [#tpu.dimension_semantics<parallel>], iteration_bounds = array<i64: 2>, scalar_prefetch = 0 : i64, scratch_operands = 0 : i64, tpu.core_type = #tpu.core_type<tc>, window_params = [{transform_indices = @transform_0, window_bounds = array<i64: 8, 128>}, {pipeline_mode = #tpu.pipeline_mode<synchronous>, transform_indices = @transform_1, window_bounds = array<i64: 128, 128>}, {pipeline_mode = #tpu.pipeline_mode<synchronous>, transform_indices = @transform_2, window_bounds = array<i64: 128, 128>}, {pipeline_mode = #tpu.pipeline_mode<synchronous>, transform_indices = @transform_3, window_bounds = array<i64: 8, 128>}, {transform_indices = @transform_4, window_bounds = array<i64: 8, 128>}]} {
    %c0 = arith.constant 0 : index
    %c0_0 = arith.constant 0 : index
    %0 = vector.load %arg1[%c0, %c0_0] : memref<8x128xf32, #tpu.memory_space<vmem>>, vector<8x128xf32>
    %1 = arith.mulf %0, %0 : vector<8x128xf32>
    %cst = arith.constant dense<0.000000e+00> : vector<8xf32>
    %2 = vector.multi_reduction <add>, %1, %cst [1] : vector<8x128xf32> to vector<8xf32>
    %3 = vector.shape_cast %2 : vector<8xf32> to vector<8x1xf32>
    %cst_1 = arith.constant 1.000000e+00 : f32
    %4 = vector.broadcast %cst_1 : f32 to vector<8x1xf32>
    %5 = arith.mulf %4, %3 : vector<8x1xf32>
    %cst_2 = arith.constant 1.000000e+00 : f32
    %6 = vector.broadcast %cst_2 : f32 to vector<8x1xf32>
    %7 = arith.addf %6, %5 : vector<8x1xf32>
    %cst_3 = arith.constant 1.000000e+00 : f32
    %8 = vector.broadcast %cst_3 : f32 to vector<8x1xf32>
    %9 = arith.mulf %8, %3 : vector<8x1xf32>
    %cst_4 = arith.constant 1.000000e+00 : f32
    %10 = vector.broadcast %cst_4 : f32 to vector<8x1xf32>
    %11 = arith.subf %10, %9 : vector<8x1xf32>
    %cst_5 = arith.constant 1.000000e-15 : f32
    %12 = vector.broadcast %cst_5 : f32 to vector<8x1xf32>
    %13 = arith.maximumf %11, %12 : vector<8x1xf32>
    %cst_6 = arith.constant 1.000000e+00 : f32
    %14 = vector.broadcast %cst_6 : f32 to vector<8x1xf32>
    %15 = arith.divf %14, %13 : vector<8x1xf32>
    %16 = arith.truncf %0 : vector<8x128xf32> to vector<8x128xbf16>
    %c0_7 = arith.constant 0 : index
    %c0_8 = arith.constant 0 : index
    %17 = vector.load %arg2[%c0_7, %c0_8] : memref<128x128xbf16, #tpu.memory_space<vmem>>, vector<128x128xbf16>
    %cst_9 = arith.constant dense<0.000000e+00> : vector<8x128xf32>
    %18 = tpu.matmul %16, %17, %cst_9 {dimension_numbers = #tpu.dot_dimension_numbers<[1], [0], [0], [1], [0, 0, 1, 1], [], []>} : vector<8x128xbf16>, vector<128x128xbf16>, vector<8x128xf32> -> vector<8x128xf32>
    %c0_10 = arith.constant 0 : index
    %c0_11 = arith.constant 0 : index
    %19 = vector.load %arg3[%c0_10, %c0_11] : memref<128x128xbf16, #tpu.memory_space<vmem>>, vector<128x128xbf16>
    %cst_12 = arith.constant dense<0.000000e+00> : vector<8x128xf32>
    %20 = tpu.matmul %16, %19, %cst_12 {dimension_numbers = #tpu.dot_dimension_numbers<[1], [0], [0], [1], [0, 0, 1, 1], [], []>} : vector<8x128xbf16>, vector<128x128xbf16>, vector<8x128xf32> -> vector<8x128xf32>
    %c0_13 = arith.constant 0 : index
    %c0_14 = arith.constant 0 : index
    %21 = vector.load %arg4[%c0_13, %c0_14] : memref<8x128xf32, #tpu.memory_space<vmem>>, vector<8x128xf32>
    %22 = vector.extract_strided_slice %21 {offsets = [0, 0], sizes = [1, 128], strides = [1, 1]} : vector<8x128xf32> to vector<1x128xf32>
    %23 = vector.extract_strided_slice %21 {offsets = [1, 0], sizes = [1, 128], strides = [1, 1]} : vector<8x128xf32> to vector<1x128xf32>
    %24 = vector.extract_strided_slice %21 {offsets = [2, 0], sizes = [1, 128], strides = [1, 1]} : vector<8x128xf32> to vector<1x128xf32>
    %25 = vector.extract_strided_slice %21 {offsets = [3, 0], sizes = [1, 128], strides = [1, 1]} : vector<8x128xf32> to vector<1x128xf32>
    %cst_15 = arith.constant 2.000000e+00 : f32
    %26 = vector.broadcast %cst_15 : f32 to vector<8x128xf32>
    %27 = arith.mulf %26, %18 : vector<8x128xf32>
    %28 = vector.broadcast %7 : vector<8x1xf32> to vector<8x128xf32>
    %29 = arith.subf %28, %27 : vector<8x128xf32>
    %30 = vector.broadcast %22 : vector<1x128xf32> to vector<8x128xf32>
    %31 = arith.mulf %29, %30 : vector<8x128xf32>
    %32 = vector.broadcast %23 : vector<1x128xf32> to vector<8x128xf32>
    %33 = arith.mulf %32, %20 : vector<8x128xf32>
    %34 = arith.addf %31, %33 : vector<8x128xf32>
    %35 = vector.broadcast %15 : vector<8x1xf32> to vector<8x128xf32>
    %36 = arith.mulf %34, %35 : vector<8x128xf32>
    %37 = vector.broadcast %24 : vector<1x128xf32> to vector<8x128xf32>
    %38 = arith.mulf %36, %37 : vector<8x128xf32>
    %39 = arith.mulf %38, %38 : vector<8x128xf32>
    %cst_16 = arith.constant 1.000000e+00 : f32
    %40 = vector.broadcast %cst_16 : f32 to vector<8x128xf32>
    %41 = arith.addf %40, %39 : vector<8x128xf32>
    %42 = math.sqrt %41 : vector<8x128xf32>
    %43 = arith.addf %38, %42 : vector<8x128xf32>
    %cst_17 = arith.constant 1.000000e-15 : f32
    %44 = vector.broadcast %cst_17 : f32 to vector<8x128xf32>
    %45 = arith.maximumf %43, %44 : vector<8x128xf32>
    %46 = math.log %45 : vector<8x128xf32>
    %47 = vector.broadcast %25 : vector<1x128xf32> to vector<8x128xf32>
    %48 = arith.mulf %47, %46 : vector<8x128xf32>
    %c0_18 = arith.constant 0 : index
    %c0_19 = arith.constant 0 : index
    %49 = vector.load %arg5[%c0_18, %c0_19] : memref<8x128xf32, #tpu.memory_space<vmem>>, vector<8x128xf32>
    tpu.vector_store %arg5[%c0_18, %c0_19], %48 {strides = array<i32>} : memref<8x128xf32, #tpu.memory_space<vmem>>, vector<8x128xf32>,
    return
  }
  func.func @transform_0(%arg0: i32) -> (i32, i32) {
    %c0_i32 = arith.constant 0 : i32
    %c0_i32_0 = arith.constant 0 : i32
    return %arg0, %c0_i32 : i32, i32
  }
  func.func @transform_1(%arg0: i32) -> (i32, i32) {
    %c0_i32 = arith.constant 0 : i32
    %c0_i32_0 = arith.constant 0 : i32
    %c0_i32_1 = arith.constant 0 : i32
    return %c0_i32, %c0_i32_0 : i32, i32
  }
  func.func @transform_2(%arg0: i32) -> (i32, i32) {
    %c0_i32 = arith.constant 0 : i32
    %c0_i32_0 = arith.constant 0 : i32
    %c0_i32_1 = arith.constant 0 : i32
    return %c0_i32, %c0_i32_0 : i32, i32
  }
  func.func @transform_3(%arg0: i32) -> (i32, i32) {
    %c0_i32 = arith.constant 0 : i32
    %c0_i32_0 = arith.constant 0 : i32
    %c0_i32_1 = arith.constant 0 : i32
    return %c0_i32, %c0_i32_0 : i32, i32
  }
  func.func @transform_4(%arg0: i32) -> (i32, i32) {
    %c0_i32 = arith.constant 0 : i32
    %c0_i32_0 = arith.constant 0 : i32
    return %arg0, %c0_i32 : i32, i32
  }
}

</mosaic_0001>

<bundles_post_ra>
// kernel: tpu_custom_call.1
= control target key start
LH: loop header
LB: loop body
LE: loop exit
PB: predicated region body
PF: predicated region fallthrough
CT: control target
= control target key end

     0   :  { %9 = vsyncpa [#allocation3], 0  ;;  %s1219_s0 = inlined_call_operand.hbm [shape: f32[16,128], index: 0, kind: input, shape index: {}]   ;;  %s1220_s1 = inlined_call_operand.hbm [shape: bf16[128,128], index: 1, kind: input, shape index: {}]   ;;  %s1221_s2 = inlined_call_operand.hbm [shape: bf16[128,128], index: 2, kind: input, shape index: {}]   ;;  %s1222_s3 = inlined_call_operand.hbm [shape: f32[8,128], index: 3, kind: input, shape index: {}]   ;;  %s1223_s4 = inlined_call_operand.hbm [shape: f32[16,128], index: 4, kind: output, shape index: {}]  }
   0x1   :  { %11 = vsyncpa [#allocation3 + $0x1], 0 }
   0x2   :  { %12 = vsyncpa [#allocation6], 0 }
   0x3   :  { %13 = vsyncpa [#allocation9], 0 }
   0x4   :  { %14 = vsyncpa [#allocation4], 0 }
   0x5   :  { %16 = vsyncpa [#allocation4 + $0x1], 0  ;;  %s1035_s15 = smov 0   ;;  %s1037_s16 = smov 0  }
   0x6   :  { %s1039_s17 = smov 0   ;;  %s1041_s18 = smov 0  }
   0x7 LB: > { %s1056_s19 = sadd.s32 4294967295, %s999_s18   ;;  %s626_s20 = sadd.s32 4294967294, %s999_s18   ;;  %s999_s18 = sphi %s1041_s18, %s1247_s18   ;;  %s995_s17 = sphi %s1039_s17, %s1246_s17   ;;  %s991_s16 = sphi %s1037_s16, %s1245_s16   ;;  %s987_s15 = sphi %s1035_s15, %s1244_s15  }
   0x8   : > { %p42_p0 = scmp.ne.s32.totalorder %s991_s16, %s987_s15  ;;  %p1224_p1 = scmp.eq.s32.totalorder %s1056_s19, 0 }
   0x9   : > { %p135_p3 = scmp.eq.s32.totalorder %s626_s20, 1  ;;  %p627_p5 = scmp.ge.s32.totalorder %s999_s18, 1 }
   0xa   : > { %p1065_p4 = por %p1224_p1, %p42_p0  ;;  %p142_p7 = scmp.lt.s32.totalorder %s999_s18, 3 }
   0xb   : > { %p1070_p6 = por %p135_p3, %p42_p0  ;;  %s1001_s24 = smov [#allocation5]  }
   0xc   : > { %s1228_s21 = scalar_select %p1065_p4, 1, 0 }
   0xd   : > { %s1229_s22 = scalar_select %p1070_p6, 1, 0 }
   0xe   : > { %p1075_p8 = pnand %p627_p5, %p142_p7  ;;  %s154_s25 = sshll.u32 %s1001_s24, 4  ;;  %s155_s25 = int_to_ptr.vmem [resolvable:$true] %s154_s25 }
   0xf   : > { %s1002_s27 = smov [#allocation7]   ;;  %s1003_s29 = smov [#allocation8]  }
  0x10   : > { %s1230_s23 = scalar_select %p1075_p8, 1, 0 }
  0x11   : > { %p734_p9 = pneg %p1075_p8  ;;  %s167_s28 = sshll.u32 %s1002_s27, 4  ;;  %s168_s28 = int_to_ptr.vmem [resolvable:$true] %s167_s28 }
  0x12   : > { %s181_s30 = sshll.u32 %s1003_s29, 4  ;;  %s832_s5 = scalar_lea.vmem %s155_s25, 1024  ;;  %s182_s30 = int_to_ptr.vmem [resolvable:$true] %s181_s30 }
  0x13   : > { %p1084_p11 = pnand %p734_p9, %p1224_p1  ;;  %p833_p13 = scmp.ne.s32.totalorder %s155_s25, %s832_s5 }
  0x14   : > { %p840_p5 = scmp.lt.s32.totalorder %s155_s25, %s155_s25  ;;  %p841_p7 = scmp.lt.s32.totalorder %s832_s5, %s832_s5 }
  0x15   : > { %p823_p12 = pneg %p1084_p11 }
  0x16   : > { %p842_p9 = por %p841_p7, %p840_p5 }
  0x17   : > { %p835_p0 = pnand %p833_p13, %p823_p12 }
  0x19   : > { %p836_p3 = pneg %p835_p0 }
  0x1b   : > { %p843_p10 = pnand %p842_p9, %p836_p3 }
  0x1d   : > { %846 = shalt.err (!%p843_p10)
}
  0x1e   : > { %s1004_s6 = smov 64   ;;  %s1005_s7 = smov 4  }
  0x1f   : > { %737 = dma.hbm_to_vmem [thread:$0]  (!%p1084_p11), %s1220_s1, 1024, %s155_s25, [#allocation6], %s1004_s6, %s1004_s6, %s1005_s7  }
  0x20   : > { %s858_s10 = scalar_lea.vmem %s168_s28, 1024  ;;  %p866_p2 = scmp.lt.s32.totalorder %s168_s28, %s168_s28 }
  0x21   : > { %p859_p1 = scmp.ne.s32.totalorder %s168_s28, %s858_s10  ;;  %p867_p6 = scmp.lt.s32.totalorder %s858_s10, %s858_s10 }
  0x23   : > { %p861_p13 = pnand %p859_p1, %p823_p12  ;;  %p868_p5 = por %p867_p6, %p866_p2 }
  0x25   : > { %p862_p0 = pneg %p861_p13 }
  0x27   : > { %p869_p3 = pnand %p868_p5, %p862_p0 }
  0x29   : > { %872 = shalt.err (!%p869_p3)
}
  0x2a   : > { %740 = dma.hbm_to_vmem [thread:$0]  (!%p1084_p11), %s1221_s2, 1024, %s168_s28, [#allocation6], %s1004_s6, %s1004_s6, %s1005_s7  }
  0x2b   : > { %s884_s13 = scalar_lea.vmem %s182_s30, 128  ;;  %p892_p9 = scmp.lt.s32.totalorder %s182_s30, %s182_s30 }
  0x2c   : > { %p885_p10 = scmp.ne.s32.totalorder %s182_s30, %s884_s13  ;;  %p893_p13 = scmp.lt.s32.totalorder %s884_s13, %s884_s13 }
  0x2e   : > { %p887_p7 = pnand %p885_p10, %p823_p12  ;;  %p894_p4 = por %p893_p13, %p892_p9 }
  0x30   : > { %p888_p1 = pneg %p887_p7 }
  0x32   : > { %p895_p2 = pnand %p894_p4, %p888_p1 }
  0x34   : > { %898 = shalt.err (!%p895_p2)
}
  0x35   : > { %743 = dma.hbm_to_vmem [thread:$0]  (!%p1084_p11), %s1222_s3, 128, %s182_s30, [#allocation9]  }
  0x36   : > { %s1115_s24 = sadd.s32 1, %s999_s18   ;;  %s29_s26 = sadd.s32 1, %s995_s17 }
  0x37   : > { %s26_s25 = ssub.s32 %s999_s18, %s1115_s24  ;;  %p36_p6 = scmp.ne.s32.totalorder %s995_s17, %s991_s16 }
  0x38   : > { %p27_p4 = scmp.eq.s32.totalorder %s26_s25, 0  ;;  %p37_p12 = scmp.eq.s32.totalorder %s999_s18, 0 }
  0x39   : > { %p755_p0 = scmp.lt.s32.totalorder %s999_s18, 2  ;;  %p1232_p3 = scmp.eq.s32.totalorder %s1056_s19, 1 }
  0x3a   : > { %s1125_s27 = scalar_select %p27_p4, %s995_s17, %s29_s26  }
  0x3b   : > { %p38_p5 = por %p37_p12, %p36_p6  ;;  %p1129_p10 = por %p1232_p3, %p36_p6 }
  0x3c   : > { %s192_s29 = sand.u32 1, %s995_s17   ;;  %s633_s5 = sshll.u32 %s999_s18, 7 }
  0x3d   : > { %s1233_s28 = scalar_select %p1129_p10, 1, 0 }
  0x3e   : > { %s632_s30 = sshll.u32 %s192_s29, 3  ;;  %s1138_s8 = scalar_lea.hbm %s1219_s0, %s633_s5 }
  0x3f   : > { %s196_s9 = scalar_lea.vmem [#allocation2], %s632_s30  ;;  %p1140_p11 = pnand %p755_p0, %p38_p5 }
  0x40   : > { %s203_s10 = sshll.u32 %s196_s9, 4  ;;  %s193_s12 = scalar_lea.sflag [#allocation3], %s192_s29  ;;  %s204_s10 = int_to_ptr.vmem [resolvable:$true] %s203_s10 }
  0x41   : > { %s899_s13 = scalar_lea.hbm %s1138_s8, 128  ;;  %p901_p1 = pneg %p1140_p11 }
  0x42   : > { %p900_p7 = scmp.ne.s32.totalorder %s1138_s8, %s899_s13  ;;  %s904_s25 = scalar_lea.hbm %s1219_s0, 256 }
  0x43   : > { %p905_p2 = scmp.lt.s32.totalorder %s1138_s8, %s1219_s0  ;;  %p906_p4 = scmp.lt.s32.totalorder %s904_s25, %s899_s13 }
  0x44   : > { %p902_p9 = pnand %p901_p1, %p900_p7 }
  0x45   : > { %p907_p6 = por %p906_p4, %p905_p2 }
  0x46   : > { %p903_p13 = pneg %p902_p9 }
  0x48   : > { %p908_p12 = pnand %p907_p6, %p903_p13 }
  0x4a   : > { %911 = shalt.err (!%p908_p12)
}
  0x4b   : > { %s912_s30 = scalar_lea.vmem %s204_s10, 128  ;;  %s1006_s29 = smov [#allocation2]  }
  0x4c   : > { %p913_p0 = scmp.ne.s32.totalorder %s204_s10, %s912_s30  ;;  %s917_s6 = sshll.u32 %s1006_s29, 4  ;;  %s918_s6 = int_to_ptr.vmem [resolvable:$false] %s917_s6 }
  0x4d   : > { %s919_s7 = scalar_lea.vmem %s918_s6, 256  ;;  %p920_p7 = scmp.lt.s32.totalorder %s204_s10, %s918_s6 }
  0x4e   : > { %p915_p5 = pnand %p913_p0, %p901_p1  ;;  %p921_p9 = scmp.lt.s32.totalorder %s919_s7, %s912_s30 }
  0x50   : > { %p916_p3 = pneg %p915_p5  ;;  %p922_p10 = por %p921_p9, %p920_p7 }
  0x52   : > { %p923_p8 = pnand %p922_p10, %p916_p3 }
  0x54   : > { %926 = shalt.err (!%p923_p8)
}
  0x55   : > { %747 = dma.hbm_to_vmem [thread:$0]  (!%p1140_p11), %s1138_s8, 128, %s204_s10, %s193_s12  }
  0x56   : > { %p1235_p13 = scmp.ne.s32.totalorder %s1230_s23, 0 }
  0x57   : > { %s1161_s9 = sand.u32 (!%p1235_p13), 1, %s991_s16   ;;  %p1236_p8 = scmp.ne.s32.totalorder (!%p1235_p13), %s1228_s21, 0 }
  0x58   : > { %212 = sbr.rel (%p1235_p13) target bundleno = 396 (0x18c), region = 36  ;;  %s635_s13 = sshll.u32 (!%p1235_p13), %s1161_s9, 3 }
  0x59   : > { %s215_s14 = scalar_lea.sflag (!%p1235_p13), [#allocation3], %s1161_s9  ;;  %s1167_s20 = scalar_lea.vmem (!%p1235_p13), [#allocation2], %s635_s13 }
  0x5d   : > { %970 = dma.done.wait (%p1236_p8), %s215_s14, 128  }
  0x5e   : > { %972 = vsyncadd (%p1236_p8), %s215_s14, 4294967168  ;;  %p1237_p10 = scmp.eq.s32.totalorder %s1056_s19, 0 }
  0x60   : > { %974 = dma.done.wait (%p1237_p10), [#allocation6], 2048   ;;  %p1238_p11 = pmov %p1237_p10 }
  0x61   : > { %p1239_p1 = pmov %p1237_p10 }
  0x62   : > { %976 = vsyncadd (%p1238_p11), [#allocation6], 4294965248 }
  0x63   : > { %978 = dma.done.wait (%p1239_p1), [#allocation9], 128   ;;  %p1240_p2 = pmov %p1239_p1 }
  0x64   : > { %v1007_v0 = vmov 0.0   ;;  %vm1008_vm0 = vmmov 0   ;;  %v799_v1 = vld [vmem:[#allocation5 + $0x38] sm:$0xff]   ;;  %v801_v3 = vld [vmem:[#allocation5 + $0x30] sm:$0xff]   ;;  %v803_v5 = vld [vmem:[#allocation5 + $0x28] sm:$0xff]   ;;  %v477_v22 = vlaneseq  ;;  %s657_s21 = sshll.u32 %s1056_s19, 7 }
  0x65   : > { %980 = vsyncadd (%p1240_p2), [#allocation9], 4294967168  ;;  %678 = vmatprep.subr.bf16.mxu0 %v1007_v0  ;;  %698 = vmatprep.subr.bf16.mxu1 %v1007_v0  ;;  %v800_v2 = vld [vmem:[#allocation7 + $0x38] sm:$0xff]   ;;  %v802_v4 = vld [vmem:[#allocation7 + $0x30] sm:$0xff]   ;;  %s254_s23 = scalar_lea.vmem [#allocation10], %s635_s13  ;;  %s525_s12 = scalar_lea.hbm %s1223_s4, %s657_s21 }
  0x66   : > { %694 = vmatprep.mubr.msk.bf16.mxu0 %vm1008_vm0, %v1007_v0  ;;  %714 = vmatprep.mubr.msk.bf16.mxu1 %vm1008_vm0, %v1007_v0  ;;  %v804_v6 = vld [vmem:[#allocation7 + $0x28] sm:$0xff]   ;;  %v805_v7 = vld [vmem:[#allocation5 + $0x20] sm:$0xff]   ;;  %v807_v9 = vld [vmem:[#allocation5 + $0x18] sm:$0xff]   ;;  %v478_v24 = vshrl.u32 %v477_v22, 7  ;;  %s527_s8 = sshll.u32 %s254_s23, 4  ;;  %s514_s25 = scalar_lea.sflag [#allocation4], %s1161_s9  ;;  %s528_s8 = int_to_ptr.vmem [resolvable:$true] %s527_s8 }
  0x67   : > { %679 = vmatpush3.bf16.msra.mxu0 %v799_v1  ;;  %699 = vmatpush3.bf16.msra.mxu1 %v800_v2  ;;  %v806_v8 = vld [vmem:[#allocation7 + $0x20] sm:$0xff]   ;;  %v808_v10 = vld [vmem:[#allocation7 + $0x18] sm:$0xff]   ;;  %v809_v13 = vld [vmem:[#allocation5 + $0x10] sm:$0xff]   ;;  %s927_s26 = scalar_lea.vmem %s528_s8, 128  ;;  %p1241_p6 = scmp.ne.s32.totalorder %s1233_s28, 0 }
  0x68   : > { %680 = vmatprep.subr.bf16.mxu0 %v1007_v0  ;;  %700 = vmatprep.subr.bf16.mxu1 %v1007_v0  ;;  %v256_v11 = vld [vmem:[%s1167_s20] sm:$0xff]  ;;  %v811_v15 = vld [vmem:[#allocation5 + $0x8] sm:$0xff]   ;;  %v813_v17 = vld [vmem:[#allocation5] sm:$0xff]   ;;  %v484_v25 = vsub.s32 1, %v478_v24  ;;  %v479_v27 = vsub.s32 0, %v478_v24  ;;  %v491_v37 = vsub.s32 2, %v478_v24  ;;  %p928_p4 = scmp.ne.s32.totalorder %s528_s8, %s927_s26 }
  0x69   : > { %v257_v12 = vmul.f32 %v256_v11, %v256_v11  ;;  %v810_v14 = vld [vmem:[#allocation7 + $0x10] sm:$0xff]   ;;  %v812_v16 = vld [vmem:[#allocation7 + $0x8] sm:$0xff]   ;;  %v814_v18 = vld [vmem:[#allocation7] sm:$0xff]   ;;  %v265_v19 = vpack.c.bf16 %v256_v11, %v256_v11  ;;  %v509_v58 = vsub.s32 3, %v478_v24  ;;  %s1009_s5 = smov [#allocation10]  }
  0x6a   : > { %v474_v26 = vld [vmem:[#allocation8] sm:$0xff]  ;;  %p929_p12 = pnand %p928_p4, %p1241_p6  ;;  %s931_s30 = sshll.u32 %s1009_s5, 4  ;;  %s932_s30 = int_to_ptr.vmem [resolvable:$false] %s931_s30 }
  0x6b   : > { %681 = vmatpush3.bf16.msra.mxu0 %v801_v3  ;;  %701 = vmatpush3.bf16.msra.mxu1 %v802_v4  ;;  %v485_v28 = vrot.slane %v474_v26, %v484_v25  ;;  %v480_v33 = vrot.slane %v474_v26, %v479_v27  ;;  %v492_v45 = vrot.slane %v474_v26, %v491_v37  ;;  %s933_s19 = scalar_lea.vmem %s932_s30, 256  ;;  %p934_p5 = scmp.lt.s32.totalorder %s528_s8, %s932_s30 }
  0x6c   : > { %682 = vmatprep.subr.bf16.mxu0 %v1007_v0  ;;  %702 = vmatprep.subr.bf16.mxu1 %v1007_v0  ;;  %v510_v59 = vrot.slane %v474_v26, %v509_v58  ;;  %p930_p0 = pneg %p929_p12  ;;  %p935_p3 = scmp.lt.s32.totalorder %s933_s19, %s927_s26 }
  0x6d   : > { %258 = vadd.xlane.f32.xlu0 %v257_v12 }
  0x6e   : > { %p936_p7 = por %p935_p3, %p934_p5 }
  0x6f   : > { %683 = vmatpush3.bf16.msra.mxu0 %v803_v5  ;;  %703 = vmatpush3.bf16.msra.mxu1 %v804_v6 }
  0x70   : > { %684 = vmatprep.subr.bf16.mxu0 %v1007_v0  ;;  %704 = vmatprep.subr.bf16.mxu1 %v1007_v0  ;;  %p937_p9 = pnand %p936_p7, %p930_p0 }
  0x73   : > { %685 = vmatpush3.bf16.msra.mxu0 %v805_v7  ;;  %705 = vmatpush3.bf16.msra.mxu1 %v806_v8 }
  0x74   : > { %686 = vmatprep.subr.bf16.mxu0 %v1007_v0  ;;  %706 = vmatprep.subr.bf16.mxu1 %v1007_v0 }
  0x77   : > { %687 = vmatpush3.bf16.msra.mxu0 %v807_v9  ;;  %707 = vmatpush3.bf16.msra.mxu1 %v808_v10 }
  0x78   : > { %688 = vmatprep.subr.bf16.mxu0 %v1007_v0  ;;  %708 = vmatprep.subr.bf16.mxu1 %v1007_v0 }
  0x7b   : > { %689 = vmatpush3.bf16.msra.mxu0 %v809_v13  ;;  %709 = vmatpush3.bf16.msra.mxu1 %v810_v14 }
  0x7c   : > { %690 = vmatprep.subr.bf16.mxu0 %v1007_v0  ;;  %710 = vmatprep.subr.bf16.mxu1 %v1007_v0 }
  0x7f   : > { %691 = vmatpush3.bf16.msra.mxu0 %v811_v15  ;;  %711 = vmatpush3.bf16.msra.mxu1 %v812_v16 }
  0x80   : > { %692 = vmatprep.subr.bf16.mxu0 %v1007_v0  ;;  %712 = vmatprep.subr.bf16.mxu1 %v1007_v0 }
  0x83   : > { %693 = vmatpush3.bf16.msra.mxu0 %v813_v17  ;;  %713 = vmatpush3.bf16.msra.mxu1 %v814_v18 }
  0x86   : > { %695 = vmatmul.mubr.bf16.vlgmr.msra.gmra.mxu0 %v265_v19  ;;  %715 = vmatmul.mubr.bf16.vlgmr.msra.gmra.mxu1 %v265_v19 }
  0xf6   : > { %v259_v20 = vpop.xlane.xlu0 %258 }
  0xf7   : > { %v261_v21 = vsub.f32 1.0, %v259_v20  ;;  %v260_v30 = vadd.f32 1.0, %v259_v20 }
  0xf9   : > { %v262_v23 = vmax.f32 %v261_v21, 1e-15 }
  0xfb   : > { %815 = vrcp.f32 %v262_v23 }
 0x108   : > { %v816_v42 = vpop.eup %815 }
 0x146   : > { %v364_v29 = vpop.f32.mrf.mxu0  ;;  %v468_v32 = vpop.f32.mrf.mxu1 }
 0x147   : > { %v475_v31 = vmul.f32 2.0, %v364_v29  ;;  %v486_v36 = vmul.f32 %v485_v28, %v468_v32 }
 0x148   : > { %v696_v34 = vpop.f32.mrf.mxu0  ;;  %v716_v38 = vpop.f32.mrf.mxu1 }
 0x149   : > { %v476_v35 = vsub.f32 %v260_v30, %v475_v31 }
 0x14a   : > { %v367_v39 = vpop.f32.mrf.mxu0  ;;  %v471_v41 = vpop.f32.mrf.mxu1 }
 0x14b   : > { %v481_v40 = vmul.f32 %v480_v33, %v476_v35 }
 0x14c   : > { %v697_v43 = vpop.f32.mrf.mxu0  ;;  %v717_v46 = vpop.f32.mrf.mxu1 }
 0x14d   : > { %v487_v44 = vadd.f32 %v486_v36, %v481_v40 }
 0x14f   : > { %v488_v47 = vmul.f32 %v816_v42, %v487_v44 }
 0x151   : > { %v493_v48 = vmul.f32 %v492_v45, %v488_v47 }
 0x153   : > { %v494_v49 = vmul.f32 %v493_v48, %v493_v48 }
 0x155   : > { %v495_v50 = vadd.f32 1.0, %v494_v49 }
 0x157   : > { %817 = vrsqrt.f32 %v495_v50  ;;  %vm498_vm1 = vcmp.eq.f32.partialorder %v495_v50, inf  ;;  %v501_v53 = vand.u32 2147483648, %v495_v50  ;;  %vm500_vm2 = vcmp.eq.f32.partialorder %v495_v50, 0.0 }
 0x164   : > { %v818_v51 = vpop.eup %817 }
 0x165   : > { %v497_v52 = vmul.f32 %v818_v51, %v495_v50 }
 0x167   : > { %v499_v54 = vsel %vm498_vm1, %v495_v50, %v497_v52 }
 0x168   : > { %v502_v55 = vsel %vm500_vm2, %v501_v53, %v499_v54 }
 0x169   : > { %v503_v56 = vadd.f32 %v502_v55, %v493_v48 }
 0x16b   : > { %v504_v57 = vmax.f32 %v503_v56, 1e-15 }
 0x16d   : > { %819 = vlog2.f32 %v504_v57 }
 0x17a   : > { %v820_v60 = vpop.eup %819 }
 0x17b   : > { %v506_v61 = vmul.f32 0.6931472, %v820_v60 }
 0x17d   : > { %v511_v62 = vmul.f32 %v510_v59, %v506_v61 }
 0x17f   : > { %512 = vst [vmem:[%s254_s23] sm:$0xff] %v511_v62 }
 0x180   : > { %940 = shalt.err (!%p937_p9)
}
 0x181   : > { %s941_s29 = scalar_lea.hbm %s525_s12, 128  ;;  %s945_s9 = scalar_lea.hbm %s1223_s4, 256 }
 0x182   : > { %p942_p13 = scmp.ne.s32.totalorder %s525_s12, %s941_s29  ;;  %p946_p11 = scmp.lt.s32.totalorder %s525_s12, %s1223_s4 }
 0x183   : > { %p947_p1 = scmp.lt.s32.totalorder %s945_s9, %s941_s29 }
 0x184   : > { %p943_p8 = pnand %p942_p13, %p1241_p6 }
 0x185   : > { %p948_p2 = por %p947_p1, %p946_p11 }
 0x186   : > { %p944_p10 = pneg %p943_p8 }
 0x188   : > { %p949_p4 = pnand %p948_p2, %p944_p10 }
 0x18a   : > { %952 = shalt.err (!%p949_p4)
}
 0x18b   : > { %732 = dma.vmem_to_hbm [thread:$0]  (%p1241_p6), %s528_s8, 128, %s525_s12, %s514_s25  }
 0x18c PF: > { %s539_s20 = sand.u32 1, %s987_s15   ;;  %p1242_p12 = scmp.ne.s32.totalorder %s1229_s22, 0 }
 0x18d   : > { %p1243_p0 = scmp.ge.s32.totalorder %s999_s18, 2  ;;  %s540_s21 = scalar_lea.sflag [#allocation4], %s539_s20 }
 0x18f   : > { %p749_p5 = pnand %p1243_p0, %p1242_p12 }
 0x191   : > { %p750_p3 = pneg %p749_p5 }
 0x193   : > { %982 = dma.done.wait (%p750_p3), %s540_s21, 128  }
 0x194   : > { %984 = vsyncadd (%p750_p3), %s540_s21, 4294967168  ;;  %p19_p7 = scmp.ge.s32.totalorder %s1115_s24, 4   ;;  %s1244_s15 = smov %s991_s16 }
 0x195   : > { %s1245_s16 = smov %s995_s17  ;;  %s1246_s17 = smov %s1125_s27 }
 0x196   : > { %s1247_s18 = smov %s1115_s24  ;;  %21 = sbr.rel (!%p19_p7) target bundleno = 7 (0x7), region = 93 }
 0x19b   :  { %545 = vsyncpa [#allocation3], 1 }
 0x19c   :  { %547 = vsyncpa [#allocation3 + $0x1], 1 }
 0x19d   :  { %548 = vsyncpa [#allocation6], 1 }
 0x19e   :  { %549 = vsyncpa [#allocation9], 1 }
 0x19f   :  { %550 = vsyncpa [#allocation4], 1 }
 0x1a0   :  { %552 = vsyncpa [#allocation4 + $0x1], 1 }

</bundles_post_ra>
